<compile_context>
chip_gen: v6e
topology: v6e:2x2x1
jax: 0.10.0
libtpu: 0.0.40
codegen_flags: <defaults>
</compile_context>

<pallas_src>
import functools
import math

import jax
import jax.numpy as jnp
from jax.experimental import pallas as pl
from jax.experimental.pallas import tpu as pltpu

LANE = 128


def _round_up(x, m):
    return (x + m - 1) // m * m


# ---------------------------------------------------------------------------
# Shared in-kernel gate math (operates on values, not refs).
# ---------------------------------------------------------------------------
def _gru_gates(z, h, w, b, *, hidden_size, norm_h):
    """z: (bb, K) f32, h: (bb, Hp) f32, w: (K, 4*Hp), b: (1, 4*Hp) f32 -> hy (bb, Hp) f32."""
    Hp = h.shape[-1]
    gates = jnp.dot(z.astype(w.dtype), w,
                    preferred_element_type=jnp.float32) + b
    resetgate = jax.nn.sigmoid(gates[:, 0 * Hp:1 * Hp])          # i_r + h_r pre-summed
    inputgate = jax.nn.sigmoid(gates[:, 1 * Hp:2 * Hp])          # i_i + h_i pre-summed
    newgate = jnp.tanh(gates[:, 2 * Hp:3 * Hp]                   # i_n
                       + resetgate * gates[:, 3 * Hp:4 * Hp])    # + r * h_n
    hy = newgate + inputgate * (h - newgate)
    if norm_h:
        # 2 * softmax(hy) - 1, masked to the real H lanes (padded lanes -> 0).
        lane = jax.lax.broadcasted_iota(jnp.int32, hy.shape, dimension=1)
        valid = lane < hidden_size
        m = jnp.max(jnp.where(valid, hy, -jnp.inf), axis=-1, keepdims=True)
        e = jnp.where(valid, jnp.exp(hy - m), 0.0)
        s = jnp.sum(e, axis=-1, keepdims=True)
        hy = jnp.where(valid, 2.0 * e * pl.reciprocal(s, approx=True) - 1.0, 0.0)
    return hy


# ---------------------------------------------------------------------------
# Single-step kernel: one fused matmul, lane-dense gates/output.
# ---------------------------------------------------------------------------
def _gru_cell_kernel(z_ref, w_ref, b_ref, hy_ref, *, hidden_size, norm_h):
    Hp = hy_ref.shape[-1]
    z = z_ref[...]                      # (bb, Hp + I), f32; [h_pad | x]
    h = z[:, :Hp]                       # lane-aligned slice (Hp % 128 == 0)
    hy = _gru_gates(z, h, w_ref[...], b_ref[...],
                    hidden_size=hidden_size, norm_h=norm_h)
    hy_ref[...] = hy.astype(hy_ref.dtype)


# ---------------------------------------------------------------------------
# Sequence-fused kernel: weights resident in VMEM, hidden carried in scratch.
# ---------------------------------------------------------------------------
def _gru_seq_kernel(h0_ref, x_ref, w_ref, b_ref, out_ref, h_scr, z_scr, *,
                    hidden_size, norm_h):
    Hp = h_scr.shape[-1]

    @pl.when(pl.program_id(0) == 0)
    def _init():
        h_scr[...] = h0_ref[...]

    h = h_scr[...]
    z_scr[:, :Hp] = h                                   # lane-aligned store
    z_scr[:, Hp:] = x_ref[...].astype(z_scr.dtype)      # x_t into staging buffer
    hy = _gru_gates(z_scr[...], h, w_ref[...], b_ref[...],
                    hidden_size=hidden_size, norm_h=norm_h)
    h_scr[...] = hy                                     # carry to next timestep
    out_ref[...] = hy.astype(out_ref.dtype)


# ---------------------------------------------------------------------------
# Parameter init (torch-equivalent) and one-time fused packing.
# ---------------------------------------------------------------------------
def init_gru_params(key, input_size, hidden_size):
    """uniform(-std, std), std = 1/sqrt(hidden_size); weights stored transposed vs torch."""
    std = 1.0 / math.sqrt(hidden_size)
    k1, k2, k3, k4 = jax.random.split(key, 4)
    wx = jax.random.uniform(k1, (input_size, 3 * hidden_size), jnp.float32, -std, std)
    bx = jax.random.uniform(k2, (3 * hidden_size,), jnp.float32, -std, std)
    wh = jax.random.uniform(k3, (hidden_size, 3 * hidden_size), jnp.float32, -std, std)
    bh = jax.random.uniform(k4, (3 * hidden_size,), jnp.float32, -std, std)
    return wx, bx, wh, bh


def pack_gru_params(wx, bx, wh, bh, hidden_size, mxu_dtype=jnp.float32):
    """Pack torch-layout GRU params into fused, lane-dense (W4, b4). Done once."""
    I = wx.shape[0]
    H = hidden_size
    Hp = _round_up(H, LANE)
    K = Hp + I
    wxr, wxz, wxn = wx[:, :H], wx[:, H:2 * H], wx[:, 2 * H:]
    whr, whz, whn = wh[:, :H], wh[:, H:2 * H], wh[:, 2 * H:]

    w4 = jnp.zeros((K, 4 * Hp), jnp.float32)
    # Rows [0:H)  <- hidden contribution, rows [Hp:Hp+I) <- input contribution.
    w4 = w4.at[:H, 0 * Hp:0 * Hp + H].set(whr)
    w4 = w4.at[:H, 1 * Hp:1 * Hp + H].set(whz)
    w4 = w4.at[:H, 3 * Hp:3 * Hp + H].set(whn)
    w4 = w4.at[Hp:Hp + I, 0 * Hp:0 * Hp + H].set(wxr)
    w4 = w4.at[Hp:Hp + I, 1 * Hp:1 * Hp + H].set(wxz)
    w4 = w4.at[Hp:Hp + I, 2 * Hp:2 * Hp + H].set(wxn)

    b4 = jnp.zeros((1, 4 * Hp), jnp.float32)
    b4 = b4.at[0, 0 * Hp:0 * Hp + H].set(bx[:H] + bh[:H])
    b4 = b4.at[0, 1 * Hp:1 * Hp + H].set(bx[H:2 * H] + bh[H:2 * H])
    b4 = b4.at[0, 2 * Hp:2 * Hp + H].set(bx[2 * H:])
    b4 = b4.at[0, 3 * Hp:3 * Hp + H].set(bh[2 * H:])
    return w4.astype(mxu_dtype), b4           # bias stays f32 (added post-accumulate)


def _gru_cost(B, K, Hp, norm_h, steps, w_itemsize):
    flops = steps * (2 * B * K * 4 * Hp + 10 * B * Hp)
    transcendentals = steps * B * Hp * (4 if norm_h else 3)
    bytes_accessed = (steps * (B * K + B * Hp) * 4
                      + K * 4 * Hp * w_itemsize + 4 * Hp * 4)
    return pl.CostEstimate(flops=flops, transcendentals=transcendentals,
                           bytes_accessed=bytes_accessed)


# ---------------------------------------------------------------------------
# Wrappers.
# ---------------------------------------------------------------------------
@functools.partial(jax.jit, static_argnames=("hidden_size", "norm_h", "block_b"))
def gru_cell_forward(x, hidden, w4, b4, *, hidden_size, norm_h=False, block_b=256):
    """Single GRU step. x: (B, I) f32, hidden: (B, H) f32, (w4, b4) from pack_gru_params."""
    B, I = x.shape
    H = hidden_size
    Hp = w4.shape[1] // 4
    K = w4.shape[0]
    pad = Hp - H
    hidden_p = hidden if pad == 0 else jnp.concatenate(
        [hidden, jnp.zeros((B, pad), hidden.dtype)], axis=1)
    z = jnp.concatenate([hidden_p, x], axis=1)          # (B, K) = [h_pad | x]

    bb = min(B, block_b)                                # batch tile (parallel on v7x 2-TC)
    grid = (pl.cdiv(B, bb),)

    hy_p = pl.pallas_call(
        functools.partial(_gru_cell_kernel, hidden_size=H, norm_h=norm_h),
        out_shape=jax.ShapeDtypeStruct((B, Hp), jnp.float32),
        grid=grid,
        in_specs=[
            pl.BlockSpec((bb, K), lambda i: (i, 0)),
            pl.BlockSpec((K, 4 * Hp), lambda i: (0, 0)),
            pl.BlockSpec((1, 4 * Hp), lambda i: (0, 0)),
        ],
        out_specs=pl.BlockSpec((bb, Hp), lambda i: (i, 0)),
        compiler_params=pltpu.CompilerParams(
            dimension_semantics=("parallel",)),
        cost_estimate=_gru_cost(B, K, Hp, norm_h, steps=1,
                                w_itemsize=jnp.dtype(w4.dtype).itemsize),
    )(z, w4, b4)
    return hy_p[:, :H]


@functools.partial(jax.jit, static_argnames=("hidden_size", "norm_h"))
def gru_sequence_forward(xs, h0, w4, b4, *, hidden_size, norm_h=False):
    """Run the GRU over a whole sequence in ONE pallas_call.

    xs: (T, B, I) f32, h0: (B, H) f32.  Weights stay resident in VMEM across
    the T grid steps; the hidden state is carried in a VMEM scratch.
    Returns all hidden states: (T, B, H).
    """
    T, B, I = xs.shape
    H = hidden_size
    Hp = w4.shape[1] // 4
    K = w4.shape[0]
    pad = Hp - H
    h0p = h0 if pad == 0 else jnp.concatenate(
        [h0, jnp.zeros((B, pad), h0.dtype)], axis=1)

    hys_p = pl.pallas_call(
        functools.partial(_gru_seq_kernel, hidden_size=H, norm_h=norm_h),
        out_shape=jax.ShapeDtypeStruct((T, B, Hp), jnp.float32),
        grid=(T,),
        in_specs=[
            pl.BlockSpec((B, Hp), lambda t: (0, 0)),          # h0 (read at t==0)
            pl.BlockSpec((None, B, I), lambda t: (t, 0, 0)),  # x_t (pipelined)
            pl.BlockSpec((K, 4 * Hp), lambda t: (0, 0)),      # W4 (resident)
            pl.BlockSpec((1, 4 * Hp), lambda t: (0, 0)),      # b4 (resident)
        ],
        out_specs=pl.BlockSpec((None, B, Hp), lambda t: (t, 0, 0)),
        scratch_shapes=[
            pltpu.VMEM((B, Hp), jnp.float32),   # carried hidden state
            pltpu.VMEM((B, K), jnp.float32),    # [h | x_t] staging buffer
        ],
        compiler_params=pltpu.CompilerParams(
            dimension_semantics=("arbitrary",)),              # recurrence over T
        cost_estimate=_gru_cost(B, K, Hp, norm_h, steps=T,
                                w_itemsize=jnp.dtype(w4.dtype).itemsize),
    )(h0p, xs, w4, b4)
    return hys_p[:, :, :H]


# ---------------------------------------------------------------------------
# Pure-JAX reference mirroring the PyTorch forward exactly.
# ---------------------------------------------------------------------------
def gru_cell_reference(x, hidden, wx, bx, wh, bh, norm_h=False):
    gate_x = x @ wx + bx
    gate_h = hidden @ wh + bh
    H = hidden.shape[1]
    i_r, i_i, i_n = gate_x[:, :H], gate_x[:, H:2 * H], gate_x[:, 2 * H:]
    h_r, h_i, h_n = gate_h[:, :H], gate_h[:, H:2 * H], gate_h[:, 2 * H:]
    resetgate = jax.nn.sigmoid(i_r + h_r)
    inputgate = jax.nn.sigmoid(i_i + h_i)
    newgate = jnp.tanh(i_n + resetgate * h_n)
    hy = newgate + inputgate * (hidden - newgate)
    if norm_h:
        hy = 2.0 * jax.nn.softmax(hy, axis=-1) - 1.0
    return hy


if __name__ == "__main__":
    B, input_size, hidden_size = 8, 16, 32

    key = jax.random.PRNGKey(0)
    kx, kh, kp, ks = jax.random.split(key, 4)
    x = jax.random.normal(kx, (B, input_size), jnp.float32)
    hidden = jax.random.normal(kh, (B, hidden_size), jnp.float32)
    wx, bx, wh, bh = init_gru_params(kp, input_size, hidden_size)

    # --- f32 MXU operands: strict check vs reference --------------------------
    w4, b4 = pack_gru_params(wx, bx, wh, bh, hidden_size, mxu_dtype=jnp.float32)
    hy = jax.block_until_ready(
        gru_cell_forward(x, hidden, w4, b4, hidden_size=hidden_size))
    ref = gru_cell_reference(x, hidden, wx, bx, wh, bh)
    assert hy.shape == (B, hidden_size)
    assert jnp.allclose(hy, ref, atol=1e-4, rtol=1e-4), "f32 cell mismatch"

    # --- norm_h fused into the kernel epilogue ---------------------------------
    hy_n = jax.block_until_ready(
        gru_cell_forward(x, hidden, w4, b4, hidden_size=hidden_size, norm_h=True))
    ref_n = gru_cell_reference(x, hidden, wx, bx, wh, bh, norm_h=True)
    assert jnp.allclose(hy_n, ref_n, atol=5e-3, rtol=5e-3), "norm_h mismatch"

    # --- bf16 MXU operands (v6e/v7x fast path), f32 accumulate & gate math -----
    w4b, b4b = pack_gru_params(wx, bx, wh, bh, hidden_size, mxu_dtype=jnp.bfloat16)
    hy_b = jax.block_until_ready(
        gru_cell_forward(x, hidden, w4b, b4b, hidden_size=hidden_size))
    assert jnp.allclose(hy_b, ref, atol=5e-2, rtol=5e-2), "bf16 cell mismatch"

    # --- sequence-fused kernel: one pallas_call for T timesteps ----------------
    T = 6
    xs = jax.random.normal(ks, (T, B, input_size), jnp.float32)
    hys = jax.block_until_ready(
        gru_sequence_forward(xs, hidden, w4, b4, hidden_size=hidden_size))
    assert hys.shape == (T, B, hidden_size)
    h_ref = hidden
    for t in range(T):
        h_ref = gru_cell_reference(xs[t], h_ref, wx, bx, wh, bh)
        assert jnp.allclose(hys[t], h_ref, atol=1e-3, rtol=1e-3), f"seq mismatch at t={t}"

    print("KERNEL_OK")
</pallas_src>

<mosaic_0001>
module attributes {stable_mosaic.version = 11 : i64} {
  func.func @_gru_cell_kernel(%arg0: i32, %arg1: memref<8x144xf32, #tpu.memory_space<vmem>>, %arg2: memref<144x512xf32, #tpu.memory_space<vmem>>, %arg3: memref<1x512xf32, #tpu.memory_space<vmem>>, %arg4: memref<8x128xf32, #tpu.memory_space<vmem>>) attributes {dimension_semantics = [#tpu.dimension_semantics<parallel>], iteration_bounds = array<i64: 1>, scalar_prefetch = 0 : i64, scratch_operands = 0 : i64, tpu.core_type = #tpu.core_type<tc>, window_params = [{transform_indices = @transform_0, window_bounds = array<i64: 8, 144>}, {pipeline_mode = #tpu.pipeline_mode<synchronous>, transform_indices = @transform_1, window_bounds = array<i64: 144, 512>}, {pipeline_mode = #tpu.pipeline_mode<synchronous>, transform_indices = @transform_2, window_bounds = array<i64: 1, 512>}, {transform_indices = @transform_3, window_bounds = array<i64: 8, 128>}]} {
    %c0 = arith.constant 0 : index
    %c0_0 = arith.constant 0 : index
    %0 = vector.load %arg1[%c0, %c0_0] : memref<8x144xf32, #tpu.memory_space<vmem>>, vector<8x144xf32>
    %1 = vector.extract_strided_slice %0 {offsets = [0, 0], sizes = [8, 128], strides = [1, 1]} : vector<8x144xf32> to vector<8x128xf32>
    %c0_1 = arith.constant 0 : index
    %c0_2 = arith.constant 0 : index
    %2 = vector.load %arg2[%c0_1, %c0_2] : memref<144x512xf32, #tpu.memory_space<vmem>>, vector<144x512xf32>
    %c0_3 = arith.constant 0 : index
    %c0_4 = arith.constant 0 : index
    %3 = vector.load %arg3[%c0_3, %c0_4] : memref<1x512xf32, #tpu.memory_space<vmem>>, vector<1x512xf32>
    %cst = arith.constant dense<0.000000e+00> : vector<8x512xf32>
    %4 = tpu.matmul %0, %2, %cst {dimension_numbers = #tpu.dot_dimension_numbers<[1], [0], [0], [1], [0, 0, 1, 1], [], []>} : vector<8x144xf32>, vector<144x512xf32>, vector<8x512xf32> -> vector<8x512xf32>
    %5 = vector.broadcast %3 : vector<1x512xf32> to vector<8x512xf32>
    %6 = arith.addf %4, %5 : vector<8x512xf32>
    %7 = vector.extract_strided_slice %6 {offsets = [0, 0], sizes = [8, 128], strides = [1, 1]} : vector<8x512xf32> to vector<8x128xf32>
    %8 = arith.negf %7 : vector<8x128xf32>
    %9 = math.exp %8 : vector<8x128xf32>
    %cst_5 = arith.constant 1.000000e+00 : f32
    %10 = vector.broadcast %cst_5 : f32 to vector<8x128xf32>
    %11 = arith.addf %10, %9 : vector<8x128xf32>
    %12 = arith.divf %10, %11 : vector<8x128xf32>
    %13 = vector.extract_strided_slice %6 {offsets = [0, 128], sizes = [8, 128], strides = [1, 1]} : vector<8x512xf32> to vector<8x128xf32>
    %14 = arith.negf %13 : vector<8x128xf32>
    %15 = math.exp %14 : vector<8x128xf32>
    %cst_6 = arith.constant 1.000000e+00 : f32
    %16 = vector.broadcast %cst_6 : f32 to vector<8x128xf32>
    %17 = arith.addf %16, %15 : vector<8x128xf32>
    %18 = arith.divf %16, %17 : vector<8x128xf32>
    %19 = vector.extract_strided_slice %6 {offsets = [0, 256], sizes = [8, 128], strides = [1, 1]} : vector<8x512xf32> to vector<8x128xf32>
    %20 = vector.extract_strided_slice %6 {offsets = [0, 384], sizes = [8, 128], strides = [1, 1]} : vector<8x512xf32> to vector<8x128xf32>
    %21 = arith.mulf %12, %20 : vector<8x128xf32>
    %22 = arith.addf %19, %21 : vector<8x128xf32>
    %23 = math.tanh %22 : vector<8x128xf32>
    %24 = arith.subf %1, %23 : vector<8x128xf32>
    %25 = arith.mulf %18, %24 : vector<8x128xf32>
    %26 = arith.addf %23, %25 : vector<8x128xf32>
    %c0_7 = arith.constant 0 : index
    %c0_8 = arith.constant 0 : index
    %27 = vector.load %arg4[%c0_7, %c0_8] : memref<8x128xf32, #tpu.memory_space<vmem>>, vector<8x128xf32>
    tpu.vector_store %arg4[%c0_7, %c0_8], %26 {strides = array<i32>} : memref<8x128xf32, #tpu.memory_space<vmem>>, vector<8x128xf32>,
    return
  }
  func.func @transform_0(%arg0: i32) -> (i32, i32) {
    %c0_i32 = arith.constant 0 : i32
    %c0_i32_0 = arith.constant 0 : i32
    return %arg0, %c0_i32 : i32, i32
  }
  func.func @transform_1(%arg0: i32) -> (i32, i32) {
    %c0_i32 = arith.constant 0 : i32
    %c0_i32_0 = arith.constant 0 : i32
    %c0_i32_1 = arith.constant 0 : i32
    return %c0_i32, %c0_i32_0 : i32, i32
  }
  func.func @transform_2(%arg0: i32) -> (i32, i32) {
    %c0_i32 = arith.constant 0 : i32
    %c0_i32_0 = arith.constant 0 : i32
    %c0_i32_1 = arith.constant 0 : i32
    return %c0_i32, %c0_i32_0 : i32, i32
  }
  func.func @transform_3(%arg0: i32) -> (i32, i32) {
    %c0_i32 = arith.constant 0 : i32
    %c0_i32_0 = arith.constant 0 : i32
    return %arg0, %c0_i32 : i32, i32
  }
}

</mosaic_0001>

<bundles_post_ra>
// kernel: gru_cell_forward.1
= control target key start
LH: loop header
LB: loop body
LE: loop exit
PB: predicated region body
PF: predicated region fallthrough
CT: control target
= control target key end

     0   :  { %8 = vsyncpa [#allocation3], 0  ;;  %s417_s0 = inlined_call_operand.vmem [shape: f32[8,144], index: 0, kind: input, shape index: {}]   ;;  %s418_s1 = inlined_call_operand.hbm [shape: f32[144,512], index: 1, kind: input, shape index: {}]   ;;  %s419_s2 = inlined_call_operand.vmem [shape: f32[1,512], index: 2, kind: input, shape index: {}]   ;;  %s420_s3 = inlined_call_operand.hbm [shape: f32[8,128], index: 3, kind: output, shape index: {}]  }
   0x1   :  { %9 = vsyncpa [#allocation4], 0  ;;  %s367_s12 = smov [#allocation2]  }
   0x2   :  { %s17_s13 = sshll.u32 %s367_s12, 4  ;;  %s18_s13 = int_to_ptr.vmem [resolvable:$true] %s17_s13 }
   0x3   :  { %s331_s14 = scalar_lea.vmem %s18_s13, 9216  ;;  %p336_p1 = scmp.lt.s32.totalorder %s18_s13, %s18_s13 }
   0x4   :  { %p332_p0 = scmp.ne.s32.totalorder %s18_s13, %s331_s14  ;;  %p337_p2 = scmp.lt.s32.totalorder %s331_s14, %s331_s14 }
   0x6   :  { %p338_p3 = por %p337_p2, %p336_p1 }
   0x8   :  { %p339_p4 = pnand %p338_p3, %p332_p0 }
   0xa   :  { %342 = shalt.err (!%p339_p4)
}
   0xb   :  { %s368_s15 = smov 512   ;;  %s369_s16 = smov 32  }
   0xc   :  { %23 = dma.hbm_to_vmem [thread:$0]  %s418_s1, 9216, %s18_s13, [#allocation3], %s368_s15, %s368_s15, %s369_s16  }
   0xd   :  { %363 = dma.done.wait [#allocation3], 9216  }
   0xe   :  { %364 = vsyncadd [#allocation3], 4294958080  ;;  %v92_v0 = vld [vmem:[#allocation2 + $0x1e8] sm:$0xff]  ;;  %v91_v1 = vld [vmem:[#allocation2 + $0x1e0] sm:$0xff]  ;;  %vm125_vm0 = vcmask 130048  }
   0xf   :  { %v88_v2 = vld [vmem:[#allocation2 + $0x1c8] sm:$0xff]  ;;  %129 = vmatprep.subr.mxu0 %v92_v0  ;;  %v87_v3 = vld [vmem:[#allocation2 + $0x1c0] sm:$0xff]  ;;  %v94_v12 = vld [vmem:[#allocation2 + $0x1f8] sm:$0xff] }
  0x10   :  { %130 = vmatpush1.msra.mxu0 %v91_v1  ;;  %v84_v4 = vld [vmem:[#allocation2 + $0x1a8] sm:$0xff]  ;;  %v83_v5 = vld [vmem:[#allocation2 + $0x1a0] sm:$0xff]  ;;  %200 = vmatprep.subr.mxu1 %v94_v12  ;;  %v93_v14 = vld [vmem:[#allocation2 + $0x1f0] sm:$0xff] }
  0x11   :  { %131 = vmatprep.subr.mxu0 %v88_v2  ;;  %v80_v6 = vld [vmem:[#allocation2 + $0x188] sm:$0xff]  ;;  %v79_v7 = vld [vmem:[#allocation2 + $0x180] sm:$0xff]  ;;  %201 = vmatpush1.msra.mxu1 %v93_v14  ;;  %v90_v16 = vld [vmem:[#allocation2 + $0x1d8] sm:$0xff] }
  0x12   :  { %132 = vmatpush1.msra.mxu0 %v87_v3  ;;  %v76_v8 = vld [vmem:[#allocation2 + $0x168] sm:$0xff]  ;;  %v75_v9 = vld [vmem:[#allocation2 + $0x160] sm:$0xff]  ;;  %v89_v17 = vld [vmem:[#allocation2 + $0x1d0] sm:$0xff]  ;;  %202 = vmatprep.subr.mxu1 %v90_v16 }
  0x13   :  { %133 = vmatprep.subr.mxu0 %v84_v4  ;;  %v72_v10 = vld [vmem:[#allocation2 + $0x148] sm:$0xff]  ;;  %v71_v11 = vld [vmem:[#allocation2 + $0x140] sm:$0xff]  ;;  %v86_v19 = vld [vmem:[#allocation2 + $0x1b8] sm:$0xff]  ;;  %203 = vmatpush1.msra.mxu1 %v89_v17 }
  0x14   :  { %134 = vmatpush1.msra.mxu0 %v83_v5  ;;  %v68_v13 = vld [vmem:[#allocation2 + $0x128] sm:$0xff]  ;;  %v67_v15 = vld [vmem:[#allocation2 + $0x120] sm:$0xff]  ;;  %v85_v21 = vld [vmem:[#allocation2 + $0x1b0] sm:$0xff]  ;;  %204 = vmatprep.subr.mxu1 %v86_v19 }
  0x15   :  { %135 = vmatprep.subr.mxu0 %v80_v6  ;;  %v64_v18 = vld [vmem:[#allocation2 + $0x108] sm:$0xff]  ;;  %v63_v20 = vld [vmem:[#allocation2 + $0x100] sm:$0xff]  ;;  %v82_v22 = vld [vmem:[#allocation2 + $0x198] sm:$0xff]  ;;  %205 = vmatpush1.msra.mxu1 %v85_v21 }
  0x16   :  { %136 = vmatpush1.msra.mxu0 %v79_v7  ;;  %v60_v23 = vld [vmem:[#allocation2 + $0xe8] sm:$0xff]  ;;  %v59_v25 = vld [vmem:[#allocation2 + $0xe0] sm:$0xff]  ;;  %v81_v26 = vld [vmem:[#allocation2 + $0x190] sm:$0xff]  ;;  %206 = vmatprep.subr.mxu1 %v82_v22 }
  0x17   :  { %137 = vmatprep.subr.mxu0 %v76_v8  ;;  %v397_v24 = vld [vmem:[%s417_s0 + $0x8] sm:$0xff]  ;;  %v78_v28 = vld [vmem:[#allocation2 + $0x178] sm:$0xff]  ;;  %v55_v29 = vld [vmem:[#allocation2 + $0xc0] sm:$0xff]  ;;  %207 = vmatpush1.msra.mxu1 %v81_v26 }
  0x18   :  { %138 = vmatpush1.msra.mxu0 %v75_v9  ;;  %v56_v27 = vld [vmem:[#allocation2 + $0xc8] sm:$0xff]  ;;  %305 = vmatprep.mubr.msk.f32.mxu0 %vm125_vm0, %v397_v24  ;;  %v77_v30 = vld [vmem:[#allocation2 + $0x170] sm:$0xff]  ;;  %v74_v32 = vld [vmem:[#allocation2 + $0x158] sm:$0xff] }
  0x19   :  { %139 = vmatprep.subr.mxu0 %v72_v10  ;;  %v52_v31 = vld [vmem:[#allocation2 + $0xa8] sm:$0xff]  ;;  %v51_v33 = vld [vmem:[#allocation2 + $0xa0] sm:$0xff]  ;;  %208 = vmatprep.subr.mxu1 %v78_v28  ;;  %v73_v34 = vld [vmem:[#allocation2 + $0x150] sm:$0xff]  ;;  %v105_v10 = vlaneseq }
  0x1a   :  { %140 = vmatpush1.msra.mxu0 %v71_v11  ;;  %v48_v35 = vld [vmem:[#allocation2 + $0x88] sm:$0xff]  ;;  %209 = vmatpush1.msra.mxu1 %v77_v30  ;;  %v70_v36 = vld [vmem:[#allocation2 + $0x138] sm:$0xff]  ;;  %v47_v37 = vld [vmem:[#allocation2 + $0x80] sm:$0xff] }
  0x1b   :  { %141 = vmatprep.subr.mxu0 %v68_v13  ;;  %210 = vmatprep.subr.mxu1 %v74_v32  ;;  %v69_v38 = vld [vmem:[#allocation2 + $0x130] sm:$0xff]  ;;  %v44_v39 = vld [vmem:[#allocation2 + $0x68] sm:$0xff]  ;;  %v66_v40 = vld [vmem:[#allocation2 + $0x118] sm:$0xff]  ;;  %v106_v11 = vshrl.u32 %v105_v10, 7 }
  0x1c   :  { %142 = vmatpush1.msra.mxu0 %v67_v15  ;;  %211 = vmatpush1.msra.mxu1 %v73_v34  ;;  %v43_v41 = vld [vmem:[#allocation2 + $0x60] sm:$0xff]  ;;  %v65_v42 = vld [vmem:[#allocation2 + $0x110] sm:$0xff]  ;;  %v40_v43 = vld [vmem:[#allocation2 + $0x48] sm:$0xff] }
  0x1d   :  { %143 = vmatprep.subr.mxu0 %v64_v18  ;;  %212 = vmatprep.subr.mxu1 %v70_v36  ;;  %v62_v44 = vld [vmem:[#allocation2 + $0xf8] sm:$0xff]  ;;  %v39_v45 = vld [vmem:[#allocation2 + $0x40] sm:$0xff]  ;;  %v61_v46 = vld [vmem:[#allocation2 + $0xf0] sm:$0xff]  ;;  %v107_v12 = vsub.s32 0, %v106_v11  ;;  %v111_v18 = vsub.s32 1, %v106_v11 }
  0x1e   :  { %144 = vmatpush1.msra.mxu0 %v63_v20  ;;  %213 = vmatpush1.msra.mxu1 %v69_v38  ;;  %v36_v47 = vld [vmem:[#allocation2 + $0x28] sm:$0xff]  ;;  %v58_v48 = vld [vmem:[#allocation2 + $0xd8] sm:$0xff]  ;;  %v35_v49 = vld [vmem:[#allocation2 + $0x20] sm:$0xff] }
  0x1f   :  { %145 = vmatprep.subr.mxu0 %v60_v23  ;;  %214 = vmatprep.subr.mxu1 %v66_v40  ;;  %v57_v50 = vld [vmem:[#allocation2 + $0xd0] sm:$0xff]  ;;  %v32_v51 = vld [vmem:[#allocation2 + $0x8] sm:$0xff]  ;;  %v54_v52 = vld [vmem:[#allocation2 + $0xb8] sm:$0xff] }
  0x20   :  { %146 = vmatpush1.msra.mxu0 %v59_v25  ;;  %215 = vmatpush1.msra.mxu1 %v65_v42  ;;  %v31_v53 = vld [vmem:[#allocation2] sm:$0xff]  ;;  %v53_v54 = vld [vmem:[#allocation2 + $0xb0] sm:$0xff]  ;;  %v100_v55 = vld [vmem:[#allocation2 + $0x228] sm:$0xff]  ;;  %v119_v25 = vsub.s32 3, %v106_v11 }
  0x21   :  { %147 = vmatprep.subr.mxu0 %v56_v27  ;;  %216 = vmatprep.subr.mxu1 %v62_v44  ;;  %v50_v56 = vld [vmem:[#allocation2 + $0x98] sm:$0xff]  ;;  %v99_v57 = vld [vmem:[#allocation2 + $0x220] sm:$0xff]  ;;  %v49_v58 = vld [vmem:[#allocation2 + $0x90] sm:$0xff]  ;;  %v115_v27 = vsub.s32 2, %v106_v11 }
  0x22   :  { %148 = vmatpush1.msra.mxu0 %v55_v29  ;;  %217 = vmatpush1.msra.mxu1 %v61_v46  ;;  %v96_v59 = vld [vmem:[#allocation2 + $0x208] sm:$0xff]  ;;  %v46_v60 = vld [vmem:[#allocation2 + $0x78] sm:$0xff]  ;;  %v95_v61 = vld [vmem:[#allocation2 + $0x200] sm:$0xff] }
  0x23   :  { %149 = vmatprep.subr.mxu0 %v52_v31  ;;  %218 = vmatprep.subr.mxu1 %v58_v48  ;;  %v45_v62 = vld [vmem:[#allocation2 + $0x70] sm:$0xff]  ;;  %v404_v63 = vld [vmem:[%s417_s0] sm:$0xff]  ;;  %v42_v0 = vld [vmem:[#allocation2 + $0x58] sm:$0xff] }
  0x24   :  { %150 = vmatpush1.msra.mxu0 %v51_v33  ;;  %219 = vmatpush1.msra.mxu1 %v57_v50  ;;  %v41_v1 = vld [vmem:[#allocation2 + $0x50] sm:$0xff]  ;;  %v38_v2 = vld [vmem:[#allocation2 + $0x38] sm:$0xff]  ;;  %v103_v13 = vld [vmem:[%s419_s2] sm:$0xf]  ;;  %s370_s2 = smov [#allocation5]  }
  0x25   :  { %151 = vmatprep.subr.mxu0 %v48_v35  ;;  %220 = vmatprep.subr.mxu1 %v54_v52  ;;  %v37_v3 = vld [vmem:[#allocation2 + $0x30] sm:$0xff]  ;;  %v34_v4 = vld [vmem:[#allocation2 + $0x18] sm:$0xff]  ;;  %v108_v14 = vrot.slane %v103_v13, %v107_v12  ;;  %v112_v19 = vrot.slane %v103_v13, %v111_v18  ;;  %v120_v28 = vrot.slane %v103_v13, %v119_v25  ;;  %s296_s23 = sshll.u32 %s370_s2, 4  ;;  %s297_s23 = int_to_ptr.vmem [resolvable:$true] %s296_s23 }
  0x26   :  { %152 = vmatpush1.msra.mxu0 %v47_v37  ;;  %221 = vmatpush1.msra.mxu1 %v53_v54  ;;  %v33_v5 = vld [vmem:[#allocation2 + $0x10] sm:$0xff]  ;;  %v102_v6 = vld [vmem:[#allocation2 + $0x238] sm:$0xff]  ;;  %v116_v30 = vrot.slane %v103_v13, %v115_v27  ;;  %s343_s24 = scalar_lea.vmem %s297_s23, 128  ;;  %p348_p6 = scmp.lt.s32.totalorder %s297_s23, %s297_s23 }
  0x27   :  { %153 = vmatprep.subr.mxu0 %v44_v39  ;;  %222 = vmatprep.subr.mxu1 %v50_v56  ;;  %v101_v7 = vld [vmem:[#allocation2 + $0x230] sm:$0xff]  ;;  %v98_v8 = vld [vmem:[#allocation2 + $0x218] sm:$0xff]  ;;  %p344_p5 = scmp.ne.s32.totalorder %s297_s23, %s343_s24  ;;  %p349_p7 = scmp.lt.s32.totalorder %s343_s24, %s343_s24 }
  0x28   :  { %154 = vmatpush1.msra.mxu0 %v43_v41  ;;  %223 = vmatpush1.msra.mxu1 %v49_v58  ;;  %v97_v9 = vld [vmem:[#allocation2 + $0x210] sm:$0xff] }
  0x29   :  { %155 = vmatprep.subr.mxu0 %v40_v43  ;;  %224 = vmatprep.subr.mxu1 %v46_v60  ;;  %p350_p8 = por %p349_p7, %p348_p6 }
  0x2a   :  { %156 = vmatpush1.msra.mxu0 %v39_v45  ;;  %225 = vmatpush1.msra.mxu1 %v45_v62 }
  0x2b   :  { %157 = vmatprep.subr.mxu0 %v36_v47  ;;  %226 = vmatprep.subr.mxu1 %v42_v0  ;;  %p351_p9 = pnand %p350_p8, %p344_p5 }
  0x2c   :  { %158 = vmatpush1.msra.mxu0 %v35_v49  ;;  %227 = vmatpush1.msra.mxu1 %v41_v1 }
  0x2d   :  { %159 = vmatprep.subr.mxu0 %v32_v51  ;;  %306 = vmatprep.mubr.msk.f32.mxu1 %vm125_vm0, %v397_v24 }
  0x2e   :  { %160 = vmatpush1.msra.mxu0 %v31_v53  ;;  %228 = vmatprep.subr.mxu1 %v38_v2 }
  0x2f   :  { %189 = vmatprep.subr.mxu0 %v100_v55  ;;  %229 = vmatpush1.msra.mxu1 %v37_v3 }
  0x30   :  { %190 = vmatpush2.msra.mxu0 %v99_v57  ;;  %230 = vmatprep.subr.mxu1 %v34_v4 }
  0x31   :  { %191 = vmatprep.subr.mxu0 %v96_v59  ;;  %231 = vmatpush1.msra.mxu1 %v33_v5 }
  0x32   :  { %192 = vmatpush2.msra.mxu0 %v95_v61  ;;  %260 = vmatprep.subr.mxu1 %v102_v6 }
  0x33   :  { %194 = vmatmul.mubr.f32.vlgmr.msra.gmra.mxu0 %v404_v63  ;;  %261 = vmatpush2.msra.mxu1 %v101_v7 }
  0x34   :  { %262 = vmatprep.subr.mxu1 %v98_v8 }
  0x35   :  { %263 = vmatpush2.msra.mxu1 %v97_v9 }
  0x36   :  { %265 = vmatmul.mubr.f32.vlgmr.msra.gmra.mxu1 %v404_v63 }
  0xf3   :  { %v195_v15 = vpop.f32.mrf.mxu0 }
  0xf4   :  { %v196_v16 = vadd.f32 %v195_v15, %v108_v14 }
  0xf5   :  { %v197_v20 = vpop.f32.mrf.mxu0 }
  0xf6   :  { %v307_v17 = vmul.f32 -1.442695, %v196_v16  ;;  %v198_v21 = vadd.f32 %v197_v20, %v112_v19  ;;  %v266_v26 = vpop.f32.mrf.mxu1 }
  0xf7   :  { %v267_v34 = vadd.f32 %v266_v26, %v116_v30 }
  0xf8   :  { %313 = vpow2.f32 %v307_v17  ;;  %v308_v22 = vmul.f32 -1.442695, %v198_v21  ;;  %v268_v29 = vpop.f32.mrf.mxu1 }
  0xf9   :  { %v269_v32 = vadd.f32 %v268_v29, %v120_v28 }
  0xfa   :  { %315 = vpow2.f32 %v308_v22 }
 0x105   :  { %v314_v23 = vpop.eup %313 }
 0x106   :  { %v274_v24 = vadd.f32 1.0, %v314_v23 }
 0x107   :  { %v316_v31 = vpop.eup %315 }
 0x108   :  { %317 = vrcp.f32 %v274_v24  ;;  %v280_v36 = vadd.f32 1.0, %v316_v31 }
 0x115   :  { %v318_v33 = vpop.eup %317 }
 0x116   :  { %v283_v35 = vmul.f32 %v318_v33, %v269_v32 }
 0x118   :  { %v284_v37 = vadd.f32 %v283_v35, %v267_v34 }
 0x11a   :  { %319 = vtanh.f32 %v284_v37 }
 0x11b   :  { %321 = vrcp.f32 %v280_v36 }
 0x127   :  { %v320_v38 = vpop.eup %319 }
 0x128   :  { %v286_v39 = vsub.f32 %v404_v63, %v320_v38  ;;  %v322_v40 = vpop.eup %321 }
 0x12a   :  { %v287_v41 = vmul.f32 %v322_v40, %v286_v39 }
 0x12c   :  { %v288_v42 = vadd.f32 %v320_v38, %v287_v41 }
 0x12e   :  { %289 = vst [vmem:[#allocation5] sm:$0xff] %v288_v42 }
 0x12f   :  { %354 = shalt.err (!%p351_p9)
}
 0x130   :  { %299 = dma.vmem_to_hbm [thread:$0]  %s297_s23, 128, %s420_s3, [#allocation4]  }
 0x131   :  { %365 = dma.done.wait [#allocation4], 128  }
 0x132   :  { %366 = vsyncadd [#allocation4], 4294967168 }
 0x133   :  { %303 = vsyncpa [#allocation3], 1 }
 0x134   :  { %304 = vsyncpa [#allocation4], 1 }

</bundles_post_ra>
